<compile_context>
chip_gen: v7x
topology: tpu7x:2x2x1
jax: 0.10.0
libtpu: 0.0.40
codegen_flags: <defaults>
</compile_context>

<pallas_src>
import functools

import numpy as np
import jax
import jax.numpy as jnp
from jax.experimental import pallas as pl
from jax.experimental.pallas import tpu as pltpu


# ---------------------------------------------------------------- configuration
def make_divisible(v, divisor=8, min_value=None, round_limit=0.9):
    min_value = min_value or divisor
    new_v = max(min_value, int(v + divisor / 2) // divisor * divisor)
    if new_v < round_limit * v:
        new_v += divisor
    return new_v


INPLANES = 64
PLANES = 16
RADIX = 4
CARDINALITY = 1
BASE_WIDTH = 64
GW = int(PLANES * (BASE_WIDTH / 64.0)) * CARDINALITY                    # group_width = 16
CG = GW // RADIX                                                        # channels / radix group = 4
ATTN_CHS = make_divisible(GW * RADIX * 0.25, min_value=32, divisor=8)   # 32
EPS = 1e-5


# ---------------------------------------------------------------- in-kernel math helpers
def _gelu(x):
    # tanh-approximate GELU: one EUP tanh + a few VALU ops (|gelu_tanh - gelu_erf| < ~3e-4).
    c0 = 0.7978845608028654  # sqrt(2/pi)
    return 0.5 * x * (1.0 + jnp.tanh(c0 * (x + 0.044715 * (x * x * x))))


def _mm(a, b):
    return jnp.dot(a, b, preferred_element_type=jnp.float32)


def _gn(x, gamma, beta, gmat, pool, expand, act=False):
    """GroupNorm in channel-major layout.
    pool:(M,S) averages the lanes of each sample, expand:(S,M) broadcasts back,
    gmat:(C,C) averages the channels within each norm group and broadcasts back."""
    cm = _mm(x, pool)                               # (C, S) per-channel per-sample mean
    mean_map = _mm(_mm(gmat, cm), expand)           # (C, M) group mean, broadcast
    d = x - mean_map
    vm = _mm(d * d, pool)
    var_map = _mm(_mm(gmat, vm), expand)            # biased variance (matches PyTorch)
    y = d * jax.lax.rsqrt(var_map + EPS) * gamma + beta
    return _gelu(y) if act else y


def _bn(x, gamma, beta, act=False):
    """Training-mode BatchNorm2d in channel-major layout: per-channel stats over all lanes."""
    m = jnp.mean(x, axis=1, keepdims=True)
    d = x - m
    v = jnp.mean(d * d, axis=1, keepdims=True)
    y = d * jax.lax.rsqrt(v + EPS) * gamma + beta
    return _gelu(y) if act else y


def _shifted_taps(x, masks_ref, wdim, roll_sign):
    """Yield (k, masked shifted x) for the 9 taps of a 3x3 / stride-1 / pad-1 conv.
    Lane index = sample*H*W + h*W + w; masks_ref[k] zeroes out-of-image taps, which also cancels
    any wrap-around across sample boundaries."""
    m = x.shape[1]
    for kh in range(3):
        for kw in range(3):
            k = kh * 3 + kw
            d = (kh - 1) * wdim + (kw - 1)
            if d == 0:
                yield k, x                                   # centre tap: always valid
            else:
                sh = pltpu.roll(x, (roll_sign * d) % m, 1)
                yield k, sh * masks_ref[pl.ds(k, 1), :]


def _conv3x3_stacked(x, wcat, masks_ref, scr_ref, wdim, roll_sign):
    """Deep-K 3x3 conv: stage the 9 masked shifts into a (9*Ci, M) VMEM scratch and contract with
    the pre-stacked (Co, 9*Ci) weight in a single MXU matmul."""
    ci = x.shape[0]
    for k, sh in _shifted_taps(x, masks_ref, wdim, roll_sign):
        scr_ref[pl.ds(k * ci, ci), :] = sh
    return _mm(wcat, scr_ref[...])


def _conv3x3_taps(x, w9_ref, masks_ref, wdim, roll_sign):
    """Per-tap 3x3 conv (kept for tiny Ci where stacked staging would need unaligned stores)."""
    acc = None
    for k, sh in _shifted_taps(x, masks_ref, wdim, roll_sign):
        t = _mm(w9_ref[k], sh)
        acc = t if acc is None else acc + t
    return acc


# ---------------------------------------------------------------- the fused kernel
def _fused_kernel(x_ref, masks_ref,
                  w1_ref, g1_ref, b1_ref,
                  wstem_ref, g0_ref, b0_ref,
                  fc1w_ref, fc1b_ref, fc20w_ref, fc20b_ref, fc21w_ref, fc21b_ref,
                  ag_ref, ab_ref, w2_ref, b2_ref,
                  wac_ref, bac_ref,
                  rsum_ref, w3s_ref, b3s_ref, g3_ref, b3_ref,
                  wc3_ref, gbn_ref, bbn_ref,
                  gm_ref, pool_ref, exp_ref, pw_ref, ph_ref, eh_ref, ew_ref,
                  o_ref, scr_ref, *, wdim, roll_sign):
    x = x_ref[...]                                   # (4*planes, M) channel-major input
    gm = gm_ref[...]                                 # (GW, GW) radix / norm-group averaging matrix
    pool = pool_ref[...]                             # (M, S)  per-sample lane average
    expand = exp_ref[...]                            # (S, M)  broadcast back to lanes

    # ---- bottleneck: conv1 (1x1) + bn1 (GroupNorm(GW//R, GW)) + GELU
    t = _mm(w1_ref[...], x)                                                      # (GW, M)
    t = _gn(t, g1_ref[...], b1_ref[...], gm, pool, expand, act=True)

    # ---- SegRSBlock: grouped 3x3 conv (block-diag, one K=144 matmul) + bn0 (train BN) + GELU
    xs = _conv3x3_stacked(t, wstem_ref[...], masks_ref, scr_ref, wdim, roll_sign)
    xs = _bn(xs, g0_ref[...], b0_ref[...], act=True)                             # (GW, M)

    # ---- coordinate attention (radix groups stay packed on sublanes; fc weights block-diagonal)
    xh = _mm(xs, pw_ref[...])                                                    # mean over W
    xw = _mm(xs, ph_ref[...])                                                    # mean over H
    yh = _mm(fc1w_ref[...], xh) + fc1b_ref[...]
    yw = _mm(fc1w_ref[...], xw) + fc1b_ref[...]
    a_h = jax.nn.sigmoid(_mm(fc20w_ref[...], yh) + fc20b_ref[...])               # (GW, B*H)
    a_w = jax.nn.sigmoid(_mm(fc21w_ref[...], yw) + fc21b_ref[...])               # (GW, B*W)
    x_attn = _mm(a_h, eh_ref[...]) * _mm(a_w, ew_ref[...]) * xs                  # (GW, M)
    x_attn = _gn(x_attn, ag_ref[...], ab_ref[...], gm, pool, expand)             # att_norm

    # ---- conv2 (3x3 per radix group, block-diagonal) + pixel attention
    x2 = _conv3x3_stacked(x_attn, w2_ref[...], masks_ref, scr_ref, wdim, roll_sign) + b2_ref[...]

    def _block_softmax(v):        # softmax over the CG channels of each radix block, per column
        e = jnp.exp(v - jnp.max(v, axis=0, keepdims=True))
        return e * pl.reciprocal(CG * _mm(gm, e), approx=True)

    g1f = _mm(_block_softmax(_mm(x_attn, pool)), expand)                         # (GW, M)
    g2f = _mm(_block_softmax(_mm(x2, pool)), expand)
    wts = CG * _mm(gm, g1f * x2 + g2f * x_attn)       # per-block channel sums, equal within block
    x_attn = x_attn * jax.nn.sigmoid(wts)
    x_attn = _mm(wac_ref[...], x_attn) + bac_ref[...]                            # attn_conv (1x1)

    # ---- main branch: radix sum + 3x3 conv + gn3 + GELU, then gate by the attention map
    xsum = _mm(rsum_ref[...], xs)                                                # (CG, M)
    xo = _conv3x3_taps(xsum, w3s_ref, masks_ref, wdim, roll_sign) + b3s_ref[...]
    xo = _gn(xo, g3_ref[...], b3_ref[...], gm, pool, expand, act=True)           # (GW, M)
    seg = xo * x_attn

    # ---- bottleneck tail: conv3 (1x1) + bn3 (train BN) + residual + GELU
    out = _bn(_mm(wc3_ref[...], seg), gbn_ref[...], bbn_ref[...])                # (4*planes, M)
    o_ref[...] = _gelu(out + x)


# ---------------------------------------------------------------- constants & weight prep helpers
def _vmem_spec():
    return pl.BlockSpec(memory_space=pltpu.MemorySpace.VMEM)


def _group_mat(channels, groups):
    cpg = channels // groups
    g = np.arange(channels) // cpg
    return jnp.asarray((g[:, None] == g[None, :]).astype(np.float32) / cpg)


def _pooling_mats(num_samples, hw):
    """pool:(S*hw, cols) lane-average within each sample; expand:(cols, S*hw) broadcast back."""
    m = num_samples * hw
    cols = max(num_samples, 8)               # pad tiny sample axis (zero cols/rows are inert)
    lane = np.arange(m)
    s = lane // hw
    pool = np.zeros((m, cols), np.float32)
    pool[lane, s] = 1.0 / hw
    expand = np.zeros((cols, m), np.float32)
    expand[s, lane] = 1.0
    return jnp.asarray(pool), jnp.asarray(expand)


def _coord_mats(num_samples, hdim, wdim):
    """Mean-over-W / mean-over-H pooling and matching broadcast-back matrices."""
    hw = hdim * wdim
    m = num_samples * hw
    lane = np.arange(m)
    s, r = lane // hw, lane % hw
    h, w = r // wdim, r % wdim
    pw = np.zeros((m, num_samples * hdim), np.float32)
    pw[lane, s * hdim + h] = 1.0 / wdim
    ph = np.zeros((m, num_samples * wdim), np.float32)
    ph[lane, s * wdim + w] = 1.0 / hdim
    eh = (pw.T * wdim).astype(np.float32)
    ew = (ph.T * hdim).astype(np.float32)
    return jnp.asarray(pw), jnp.asarray(ph), jnp.asarray(eh), jnp.asarray(ew)


def _tap_masks(num_samples, hdim, wdim):
    """(9, M) f32 validity masks for the 9 taps of a 3x3 / pad-1 conv (precomputed host-side)."""
    hw = hdim * wdim
    m = num_samples * hw
    lane = np.arange(m)
    r = lane % hw
    h, w = r // wdim, r % wdim
    masks = np.zeros((9, m), np.float32)
    for kh in range(3):
        for kw in range(3):
            dh, dw = kh - 1, kw - 1
            valid = (h + dh >= 0) & (h + dh < hdim) & (w + dw >= 0) & (w + dw < wdim)
            masks[kh * 3 + kw] = valid.astype(np.float32)
    return jnp.asarray(masks)


def _taps(w):
    # (Co, Ci, 3, 3) -> (9, Co, Ci), k = kh*3 + kw
    co, ci = w.shape[0], w.shape[1]
    return jnp.transpose(w, (2, 3, 0, 1)).reshape(9, co, ci).astype(jnp.float32)


def _stack_taps(w9):
    # (9, Co, Ci) -> (Co, 9*Ci): columns k*Ci..(k+1)*Ci hold tap k (matches the staging order).
    co, ci = w9.shape[1], w9.shape[2]
    return jnp.transpose(w9, (1, 0, 2)).reshape(co, 9 * ci)


def _detect_roll_sign():
    """Resolve pltpu.roll direction with a tiny probe kernel (run once, outside the hot path):
    return sign s such that pltpu.roll(x, (s*d) % n, axis)[..., i] == x[..., (i + d) % n]."""
    def kern(x_ref, o_ref):
        o_ref[...] = pltpu.roll(x_ref[...], 1, 1)
    x = jnp.tile(jnp.arange(128, dtype=jnp.float32)[None, :], (8, 1))
    y = pl.pallas_call(kern, out_shape=jax.ShapeDtypeStruct((8, 128), jnp.float32),
                       in_specs=[_vmem_spec()], out_specs=_vmem_spec())(x)
    return -1 if float(y[0, 0]) == 127.0 else 1          # numpy semantics -> -1


# ---------------------------------------------------------------- parameters
def init_params(key):
    ks = iter(jax.random.split(key, 32))

    def rnd(shape, scale=0.1):
        return (scale * jax.random.normal(next(ks), shape)).astype(jnp.float32)

    return {
        # bottleneck
        "conv1_w": rnd((GW, INPLANES, 1, 1)),
        "bn1_g": 1.0 + rnd((GW,), 0.05), "bn1_b": rnd((GW,), 0.05),
        "conv3_w": rnd((4 * PLANES, GW, 1, 1)),
        "bn3_g": 1.0 + rnd((4 * PLANES,), 0.05), "bn3_b": rnd((4 * PLANES,), 0.05),
        # SegRSBlock
        "s_conv_w": rnd((GW, CG, 3, 3)),                        # grouped 3x3, groups = radix
        "bn0_g": 1.0 + rnd((GW,), 0.05), "bn0_b": rnd((GW,), 0.05),
        "fc1_w": rnd((ATTN_CHS, CG, 1, 1)), "fc1_b": rnd((ATTN_CHS,), 0.05),
        "fc2_0_w": rnd((CG, ATTN_CHS, 1, 1)), "fc2_0_b": rnd((CG,), 0.05),
        "fc2_1_w": rnd((CG, ATTN_CHS, 1, 1)), "fc2_1_b": rnd((CG,), 0.05),
        "attn_g": 1.0 + rnd((CG,), 0.05), "attn_b": rnd((CG,), 0.05),
        "conv2_w": rnd((CG, CG, 3, 3)), "conv2_b": rnd((CG,), 0.05),
        "s_conv3_w": rnd((GW, CG, 3, 3)), "s_conv3_b": rnd((GW,), 0.05),
        "gn3_g": 1.0 + rnd((GW,), 0.05), "gn3_b": rnd((GW,), 0.05),
        "attn_conv_w": rnd((GW, GW, 1, 1)), "attn_conv_b": rnd((GW,), 0.05),
    }


# ---------------------------------------------------------------- forward (single fused kernel)
def forward(p, x, *, roll_sign=-1):
    B, cin, H, Wd = x.shape
    assert cin == INPLANES and cin == 4 * PLANES
    HW = H * Wd
    M1 = B * HW
    f32 = jnp.float32
    col = lambda a: a.reshape(-1, 1).astype(f32)
    rep = lambda a: jnp.tile(a.astype(f32), RADIX).reshape(-1, 1)    # replicate per radix block

    # constant matrices (independent of the parameters)
    gm16 = _group_mat(GW, GW // RADIX)           # serves bn1 / att_norm / gn3 / radix-block ops
    blockmask = RADIX * gm16                     # 1 inside each radix block, 0 elsewhere
    rsum = jnp.asarray(np.tile(np.eye(CG, dtype=np.float32), (1, RADIX)))   # radix sum (CG, GW)
    masks = _tap_masks(B, H, Wd)                                            # (9, M1)
    pool_b, exp_b = _pooling_mats(B, HW)
    pw, ph, eh, ew = _coord_mats(B, H, Wd)

    # weight prep: 1x1 convs as matrices; 3x3 convs as stacked-tap / block-diagonal matrices so the
    # whole attention path runs in the packed (GW, M1) layout (no radix split/merge transposes).
    w1 = p["conv1_w"].reshape(GW, INPLANES).astype(f32)
    wstem = _stack_taps(jnp.tile(_taps(p["s_conv_w"]), (1, 1, RADIX)) * blockmask[None])   # (16,144)
    w2cat = _stack_taps(jnp.tile(_taps(p["conv2_w"]), (1, RADIX, RADIX)) * blockmask[None])
    w3s9 = _taps(p["s_conv3_w"])                                            # (9, GW, CG)
    eyeR = jnp.eye(RADIX, dtype=f32)
    fc1w = jnp.kron(eyeR, p["fc1_w"].reshape(ATTN_CHS, CG).astype(f32))     # (R*ATTN, GW)
    fc20w = jnp.kron(eyeR, p["fc2_0_w"].reshape(CG, ATTN_CHS).astype(f32))  # (GW, R*ATTN)
    fc21w = jnp.kron(eyeR, p["fc2_1_w"].reshape(CG, ATTN_CHS).astype(f32))
    wac = p["attn_conv_w"].reshape(GW, GW).astype(f32)
    wc3 = p["conv3_w"].reshape(4 * PLANES, GW).astype(f32)

    xcm = x.transpose(1, 0, 2, 3).reshape(cin, M1).astype(f32)   # channel-major, lanes = B*H*W

    args = (xcm, masks,
            w1, col(p["bn1_g"]), col(p["bn1_b"]),
            wstem, col(p["bn0_g"]), col(p["bn0_b"]),
            fc1w, rep(p["fc1_b"]), fc20w, rep(p["fc2_0_b"]), fc21w, rep(p["fc2_1_b"]),
            rep(p["attn_g"]), rep(p["attn_b"]), w2cat, rep(p["conv2_b"]),
            wac, col(p["attn_conv_b"]),
            rsum, w3s9, col(p["s_conv3_b"]), col(p["gn3_g"]), col(p["gn3_b"]),
            wc3, col(p["bn3_g"]), col(p["bn3_b"]),
            gm16, pool_b, exp_b, pw, ph, eh, ew)

    out_cm = pl.pallas_call(
        functools.partial(_fused_kernel, wdim=Wd, roll_sign=roll_sign),
        out_shape=jax.ShapeDtypeStruct((4 * PLANES, M1), f32),
        in_specs=[_vmem_spec()] * len(args),
        out_specs=_vmem_spec(),
        scratch_shapes=[pltpu.VMEM((9 * GW, M1), f32)],   # tap-staging scratch for the deep-K convs
    )(*args)

    return out_cm.reshape(4 * PLANES, B, H, Wd).transpose(1, 0, 2, 3)


# ---------------------------------------------------------------- pure-XLA reference (verification)
def reference_forward(p, x):
    B, _, H, Wd = x.shape
    HI = jax.lax.Precision.HIGHEST

    def conv(v, w, b=None, groups=1):
        kh, kw = w.shape[2], w.shape[3]
        y = jax.lax.conv_general_dilated(
            v, w, window_strides=(1, 1),
            padding=((kh // 2, kh // 2), (kw // 2, kw // 2)),
            dimension_numbers=("NCHW", "OIHW", "NCHW"),
            feature_group_count=groups, precision=HI)
        return y if b is None else y + b.reshape(1, -1, 1, 1)

    def gelu(v):
        return 0.5 * v * (1.0 + jax.scipy.special.erf(v * 0.7071067811865476))

    def group_norm(v, g, b, groups):
        vr = v.reshape(v.shape[0], groups, -1)
        m = vr.mean(axis=2, keepdims=True)
        var = ((vr - m) ** 2).mean(axis=2, keepdims=True)
        vn = ((vr - m) * jax.lax.rsqrt(var + EPS)).reshape(v.shape)
        return vn * g.reshape(1, -1, 1, 1) + b.reshape(1, -1, 1, 1)

    def batch_norm(v, g, b):
        m = v.mean(axis=(0, 2, 3), keepdims=True)
        var = ((v - m) ** 2).mean(axis=(0, 2, 3), keepdims=True)
        return (v - m) * jax.lax.rsqrt(var + EPS) * g.reshape(1, -1, 1, 1) + b.reshape(1, -1, 1, 1)

    out = gelu(group_norm(conv(x, p["conv1_w"]), p["bn1_g"], p["bn1_b"], GW // RADIX))
    xs = gelu(batch_norm(conv(out, p["s_conv_w"], groups=RADIX), p["bn0_g"], p["bn0_b"]))
    x_gap = xs.reshape(B * RADIX, CG, H, Wd)
    x_h = x_gap.mean(axis=3, keepdims=True)
    x_w = x_gap.mean(axis=2, keepdims=True).transpose(0, 1, 3, 2)
    y = conv(jnp.concatenate([x_h, x_w], axis=2), p["fc1_w"], p["fc1_b"])
    yh, yw = y[:, :, :H, :], y[:, :, H:, :]
    a_h = jax.nn.sigmoid(conv(yh, p["fc2_0_w"], p["fc2_0_b"]))
    a_w = jax.nn.sigmoid(conv(yw.transpose(0, 1, 3, 2), p["fc2_1_w"], p["fc2_1_b"]))
    x_attn = group_norm(a_h * a_w * x_gap, p["attn_g"], p["attn_b"], CG // RADIX)
    x1, x2 = x_attn, conv(x_attn, p["conv2_w"], p["conv2_b"])
    s1 = jax.nn.softmax(x1.mean(axis=(2, 3)), axis=-1)[:, None, :]
    s2 = jax.nn.softmax(x2.mean(axis=(2, 3)), axis=-1)[:, None, :]
    wts = (jnp.matmul(s1, x2.reshape(B * RADIX, CG, H * Wd), precision=HI)
           + jnp.matmul(s2, x1.reshape(B * RADIX, CG, H * Wd), precision=HI))
    x_attn = x_attn * jax.nn.sigmoid(wts.reshape(B * RADIX, 1, H, Wd))
    x_attn = conv(x_attn.reshape(B, GW, H, Wd), p["attn_conv_w"], p["attn_conv_b"])
    xm = xs.reshape(B, RADIX, CG, H, Wd).sum(axis=1)
    xo = gelu(group_norm(conv(xm, p["s_conv3_w"], p["s_conv3_b"]),
                         p["gn3_g"], p["gn3_b"], GW // RADIX))
    seg = xo * x_attn
    o3 = batch_norm(conv(seg, p["conv3_w"]), p["bn3_g"], p["bn3_b"])
    return gelu(o3 + x)


# ---------------------------------------------------------------- main
if __name__ == "__main__":
    key = jax.random.PRNGKey(0)
    kp, kx = jax.random.split(key)
    params = init_params(kp)
    # inplanes must equal planes*4 (downsample=None residual add); NCHW input.
    x = jax.random.normal(kx, (2, INPLANES, 8, 8), dtype=jnp.float32)

    roll_sign = _detect_roll_sign()
    fwd = jax.jit(functools.partial(forward, roll_sign=roll_sign))
    y = fwd(params, x)
    jax.block_until_ready(y)

    assert y.shape == (2, 4 * PLANES, 8, 8), y.shape
    assert y.dtype == jnp.float32
    assert bool(jnp.all(jnp.isfinite(y)))

    # correctness check against a straightforward XLA implementation of the same module
    y_ref = jax.jit(reference_forward)(params, x)
    err = float(jnp.max(jnp.abs(y - y_ref)))
    assert err < 2e-2, f"max abs error vs reference: {err}"

    print("KERNEL_OK")
</pallas_src>

<mosaic_0001>
module attributes {stable_mosaic.version = 11 : i64} {
  func.func @kern(%arg0: memref<8x128xf32, #tpu.memory_space<vmem>>, %arg1: memref<8x128xf32, #tpu.memory_space<vmem>>) attributes {dimension_semantics = [], scalar_prefetch = 0 : i64, scratch_operands = 0 : i64, tpu.core_type = #tpu.core_type<tc>} {
    %c0 = arith.constant 0 : index
    %c0_0 = arith.constant 0 : index
    %0 = vector.load %arg0[%c0, %c0_0] : memref<8x128xf32, #tpu.memory_space<vmem>>, vector<8x128xf32>
    %c1_i32 = arith.constant 1 : i32
    %1 = tpu.dynamic_rotate %0 by %c1_i32 dim 1 : vector<8x128xf32>, i32 -> vector<8x128xf32>
    %c0_1 = arith.constant 0 : index
    %c0_2 = arith.constant 0 : index
    %2 = vector.load %arg1[%c0_1, %c0_2] : memref<8x128xf32, #tpu.memory_space<vmem>>, vector<8x128xf32>
    tpu.vector_store %arg1[%c0_1, %c0_2], %1 {strides = array<i32>} : memref<8x128xf32, #tpu.memory_space<vmem>>, vector<8x128xf32>,
    return
  }
}

</mosaic_0001>

<bundles_post_ra>
// kernel: tpu_custom_call.1
= control target key start
LH: loop header
LB: loop body
LE: loop exit
PB: predicated region body
PF: predicated region fallthrough
CT: control target
= control target key end

     0   :  { %6 = vsyncpa [#allocation3], 0  ;;  %s128_s0 = inlined_call_operand.hbm [shape: f32[8,128], index: 0, kind: input, shape index: {}]   ;;  %s129_s1 = inlined_call_operand.hbm [shape: f32[8,128], index: 1, kind: output, shape index: {}]  }
   0x1   :  { %7 = vsyncpa [#allocation4], 0  ;;  %s91_s6 = smov [#allocation2]   ;;  %s43_s10 = scalar_lea.hbm %s128_s0, 128 }
   0x2   :  { %s14_s7 = sshll.u32 %s91_s6, 4  ;;  %p44_p0 = scmp.ne.s32.totalorder %s128_s0, %s43_s10  ;;  %s15_s7 = int_to_ptr.vmem [resolvable:$true] %s14_s7 }
   0x3   :  { %p47_p1 = scmp.lt.u32.totalorder %s43_s10, %s128_s0 }
   0x5   :  { %p49_p2 = pnand %p47_p1, %p44_p0 }
   0x7   :  { %52 = shalt.err (!%p49_p2)
}
   0x8   :  { %s53_s15 = scalar_lea.vmem %s15_s7, 128  ;;  %p58_p4 = scmp.lt.s32.totalorder %s15_s7, %s15_s7 }
   0x9   :  { %p54_p3 = scmp.ne.s32.totalorder %s15_s7, %s53_s15  ;;  %p59_p5 = scmp.lt.s32.totalorder %s53_s15, %s53_s15 }
   0xb   :  { %p60_p6 = por %p59_p5, %p58_p4 }
   0xd   :  { %p61_p7 = pnand %p60_p6, %p54_p3 }
   0xf   :  { %64 = shalt.err (!%p61_p7)
}
  0x10   :  { %17 = dma.hbm_to_vmem [thread:$0]  %s128_s0, 128, %s15_s7, [#allocation3]  }
  0x11   :  { %87 = dma.done.wait [#allocation3], 128  }
  0x12   :  { %88 = vsyncadd [#allocation3], 4294967168  ;;  %v21_v0 = vld [vmem:[#allocation2] sm:$0xff]  ;;  %s92_s18 = smov 1   ;;  %s93_s19 = smov [#allocation5]  }
  0x13   :  { %22 = vrot.lane.b32.xlu0 %v21_v0, %s92_s18  ;;  %s31_s20 = sshll.u32 %s93_s19, 4  ;;  %s32_s20 = int_to_ptr.vmem [resolvable:$true] %s31_s20 }
  0x14   :  { %s65_s21 = scalar_lea.vmem %s32_s20, 128  ;;  %p70_p9 = scmp.lt.s32.totalorder %s32_s20, %s32_s20 }
  0x15   :  { %p66_p8 = scmp.ne.s32.totalorder %s32_s20, %s65_s21  ;;  %p71_p10 = scmp.lt.s32.totalorder %s65_s21, %s65_s21 }
  0x17   :  { %p72_p11 = por %p71_p10, %p70_p9 }
  0x19   :  { %p73_p12 = pnand %p72_p11, %p66_p8 }
  0x85   :  { %v23_v1 = vpop.permute.xlu0 %22 }
  0x86   :  { %24 = vst [vmem:[#allocation5] sm:$0xff] %v23_v1 }
  0x87   :  { %76 = shalt.err (!%p73_p12)
}
  0x88   :  { %s77_s0 = scalar_lea.hbm %s129_s1, 128 }
  0x89   :  { %p78_p13 = scmp.ne.s32.totalorder %s129_s1, %s77_s0  ;;  %p81_p0 = scmp.lt.u32.totalorder %s77_s0, %s129_s1 }
  0x8b   :  { %p83_p1 = pnand %p81_p0, %p78_p13 }
  0x8d   :  { %86 = shalt.err (!%p83_p1)
}
  0x8e   :  { %34 = dma.vmem_to_hbm [thread:$0]  %s32_s20, 128, %s129_s1, [#allocation4]  }
  0x8f   :  { %89 = dma.done.wait [#allocation4], 128  }
  0x90   :  { %90 = vsyncadd [#allocation4], 4294967168 }
  0x91   :  { %38 = vsyncpa [#allocation3], 1 }
  0x92   :  { %39 = vsyncpa [#allocation4], 1 }

</bundles_post_ra>
